<compile_context>
chip_gen: v7x
topology: tpu7x:2x2x1
jax: 0.10.0
libtpu: 0.0.40
codegen_flags: <defaults>
</compile_context>

<pallas_src>
import functools

import numpy as np

import jax
import jax.numpy as jnp
from jax.experimental import pallas as pl
from jax.experimental.pallas import tpu as pltpu


_LANE_CANDIDATES = (512, 256, 128)   # lane-dense last-dim candidates
_TARGET_BLOCK_BYTES = 2 << 20        # ~2 MiB per input block
_MAX_BLOCK_BYTES = 4 << 20           # beyond this -> plain-XLA fallback
_VMEM_SLACK = 4 << 20


def _round_up(x, m):
    return -(-x // m) * m


def _pick_lane_width(total):
    """Largest lane width dividing `total` that still leaves >= 8 rows."""
    for lw in _LANE_CANDIDATES:
        if total % lw == 0 and total // lw >= 8:
            return lw
    return None


def _row_tile(rows, padded_row_bytes):
    """Row tile: multiple of 8 (or == rows when rows <= 8), ~2 MiB blocks,
    and >= 2 blocks when there is enough work (v7x megacore)."""
    if rows <= 8:
        return rows
    cap = max(8, (_TARGET_BLOCK_BYTES // padded_row_bytes) // 8 * 8)
    tm = min(cap, (rows // 8) * 8)
    if pl.cdiv(rows, tm) == 1 and rows >= 16:
        tm = _round_up(pl.cdiv(rows, 2), 8)
    return tm


# ----------------------------------------------------------------------------
# Elementwise focal-loss math (shared by both kernels, computed in f32).
# ----------------------------------------------------------------------------
def _focal_math(x, t, alpha, gamma, approx_recip):
    e = jnp.exp(-jnp.abs(x))                                # EUP
    one_plus_e = 1.0 + e
    ce = jnp.maximum(x, 0.0) - x * t + jnp.log1p(e)         # stable BCE-with-logits
    if approx_recip:
        inv = pl.reciprocal(one_plus_e, approx=True)        # EUP vrcp, no Newton step
    else:
        inv = 1.0 / one_plus_e
    p = jnp.where(x >= 0, inv, e * inv)                     # sigmoid(x)

    # m = 1 - p_t  with  p_t = p*t + (1-p)*(1-t)   ==>   m = p + t - 2*p*t
    m = p + t - 2.0 * (p * t)

    g = float(gamma)
    if g == 2.0:
        focal = m * m                                       # VALU, not exp/log power
    elif g == 0.0:
        focal = jnp.ones_like(m)
    elif g.is_integer() and 0.0 < g <= 8.0:
        focal = m
        for _ in range(int(g) - 1):
            focal = focal * m
    else:
        focal = jnp.power(m, g)

    loss = ce * focal
    if alpha >= 0:
        # alpha*t + (1-alpha)*(1-t)  ==  (1-alpha) + (2*alpha-1)*t
        loss = ((1.0 - alpha) + (2.0 * alpha - 1.0) * t) * loss
    return loss


# ----------------------------------------------------------------------------
# Kernels.
# ----------------------------------------------------------------------------
def _map_kernel(x_ref, t_ref, o_ref, *, alpha, gamma, approx):
    x = x_ref[...].astype(jnp.float32)
    t = t_ref[...].astype(jnp.float32)
    o_ref[...] = _focal_math(x, t, alpha, gamma, approx).astype(o_ref.dtype)


def _reduce_kernel(x_ref, t_ref, o_ref, acc_ref, *,
                   alpha, gamma, approx, valid_rows, block_rows,
                   nb, npc, mask_last, has_overshoot, lane_out):
    c = pl.program_id(0)            # TensorCore split ("parallel")
    i = pl.program_id(1)            # per-core block index ("arbitrary")
    logical = c * npc + i           # logical row-block index

    @pl.when(i == 0)
    def _init():
        acc_ref[...] = jnp.zeros_like(acc_ref)

    def _accumulate(mask_rows):
        x = x_ref[...].astype(jnp.float32)
        t = t_ref[...].astype(jnp.float32)
        loss = _focal_math(x, t, alpha, gamma, approx)
        if mask_rows:
            row = (jax.lax.broadcasted_iota(jnp.int32, loss.shape, 0)
                   + logical * block_rows)
            loss = jnp.where(row < valid_rows, loss, 0.0)
        acc_ref[...] += loss        # elementwise adds; hides under DMA

    if mask_last:
        # Only the last valid block carries ragged rows; everything else is
        # a plain unmasked add.  Overshoot (duplicate) blocks are skipped.
        @pl.when(logical == nb - 1)
        def _last():
            _accumulate(True)

        @pl.when(logical < nb - 1)
        def _bulk():
            _accumulate(False)
    elif has_overshoot:
        @pl.when(logical < nb)
        def _guarded():
            _accumulate(False)
    else:
        _accumulate(False)

    @pl.when(i == npc - 1)
    def _finalize():
        acc = acc_ref[...]
        tm, lanes = acc.shape
        if lane_out:
            # (tm, lanes) -> (8, lanes) via VALU adds, then fold 128-lane
            # groups with static lane-aligned slices -> one (8, 128) tile.
            folded = jnp.sum(acc.reshape(tm // 8, 8, lanes), axis=0)
            tile = folded[:, 0:128]
            for k in range(1, lanes // 128):
                tile = tile + folded[:, k * 128:(k + 1) * 128]
            o_ref[...] = tile
        else:
            o_ref[...] = jnp.sum(acc, keepdims=True)        # (1, 1)


# ----------------------------------------------------------------------------
# Pure-JAX reference (torchvision sigmoid_focal_loss) - used for testing and
# as a guard-rail fallback for pathological shapes.
# ----------------------------------------------------------------------------
def _focal_reference(inputs, targets, alpha=0.25, gamma=2.0):
    x = inputs.astype(jnp.float32)
    t = targets.astype(jnp.float32)
    p = jax.nn.sigmoid(x)
    ce = jnp.maximum(x, 0.0) - x * t + jnp.log1p(jnp.exp(-jnp.abs(x)))
    p_t = p * t + (1.0 - p) * (1.0 - t)
    loss = ce * (1.0 - p_t) ** gamma
    alpha_t = alpha * t + (1.0 - alpha) * (1.0 - t)
    return alpha_t * loss


# ----------------------------------------------------------------------------
# Wrapper.
# ----------------------------------------------------------------------------
def sigmoid_focal_loss_pallas(inputs, targets, *, gamma_threshold=0.25,
                              gamma=2.0, reduction="none", out_dtype=None,
                              approx_sigmoid=True):
    if inputs.shape != targets.shape:
        raise ValueError("inputs and targets must have the same shape")
    if reduction not in ("none", "sum", "mean"):
        raise ValueError(f"unknown reduction: {reduction}")

    orig_shape = inputs.shape
    total = int(np.prod(orig_shape)) if orig_shape else 1
    if out_dtype is None:
        out_dtype = (inputs.dtype if jnp.issubdtype(inputs.dtype, jnp.floating)
                     else jnp.float32)
    alpha = float(gamma_threshold)
    gamma = float(gamma)

    if total == 0:
        if reduction == "none":
            return jnp.zeros(orig_shape, out_dtype)
        if reduction == "sum":
            return jnp.zeros((), out_dtype)
        return jnp.full((), jnp.nan, out_dtype)

    # ---- pick a ZERO-COPY 2D view (no jnp.pad / no output slice) -----------
    lw = _pick_lane_width(total)
    if lw is not None:
        rows, cols = total // lw, lw                         # lane-dense slab
    elif len(orig_shape) >= 2:
        rows, cols = total // orig_shape[-1], orig_shape[-1]  # original layout
    else:
        rows, cols = 1, total                                 # tiny / 1-D leftovers

    padded_row_bytes = _round_up(cols, 128) * 4
    tm = _row_tile(rows, padded_row_bytes)
    block_bytes = tm * padded_row_bytes

    if block_bytes > _MAX_BLOCK_BYTES:
        # TODO(synk): tile the (huge, non-128-aligned) lane dimension as well
        # instead of falling back to plain XLA for this pathological shape.
        loss = _focal_reference(inputs, targets, alpha=alpha, gamma=gamma)
        if reduction == "none":
            return loss.astype(out_dtype)
        red = jnp.sum(loss) if reduction == "sum" else jnp.mean(loss)
        return red.astype(out_dtype)

    x2 = inputs.reshape(rows, cols)
    t2 = targets.reshape(rows, cols)
    nb = pl.cdiv(rows, tm)

    # ---------------------------- reduction='none' --------------------------
    if reduction == "none":
        kernel = functools.partial(_map_kernel, alpha=alpha, gamma=gamma,
                                   approx=approx_sigmoid)
        vmem = 3 * 2 * block_bytes + _VMEM_SLACK
        out = pl.pallas_call(
            kernel,
            out_shape=jax.ShapeDtypeStruct((rows, cols), out_dtype),
            grid=(nb,),
            in_specs=[pl.BlockSpec((tm, cols), lambda i: (i, 0)),
                      pl.BlockSpec((tm, cols), lambda i: (i, 0))],
            out_specs=pl.BlockSpec((tm, cols), lambda i: (i, 0)),
            compiler_params=pltpu.CompilerParams(
                dimension_semantics=("parallel",),
                vmem_limit_bytes=int(vmem)),
        )(x2, t2)
        return out.reshape(orig_shape)

    # ------------------------- reduction='sum'/'mean' -----------------------
    lane_out = (cols % 128 == 0) and (tm % 8 == 0)
    split = 2 if (lane_out and nb >= 2) else 1        # 2 TensorCores on v7x
    npc = pl.cdiv(nb, split)
    mask_last = (rows % tm) != 0
    has_overshoot = split * npc > nb

    def in_map(c, i):
        # Clamp the duplicate overshoot block (it is skipped in the kernel).
        return (jnp.minimum(c * npc + i, nb - 1), 0)

    if lane_out:
        out_shape = jax.ShapeDtypeStruct((split * 8, 128), jnp.float32)
        out_spec = pl.BlockSpec((8, 128), lambda c, i: (c, 0))
    else:
        out_shape = jax.ShapeDtypeStruct((1, 1), jnp.float32)
        out_spec = pl.BlockSpec((1, 1), lambda c, i: (0, 0))

    kernel = functools.partial(
        _reduce_kernel, alpha=alpha, gamma=gamma, approx=approx_sigmoid,
        valid_rows=rows, block_rows=tm, nb=nb, npc=npc,
        mask_last=mask_last, has_overshoot=has_overshoot, lane_out=lane_out)

    vmem = 2 * 2 * block_bytes + block_bytes + _VMEM_SLACK
    partials = pl.pallas_call(
        kernel,
        out_shape=out_shape,
        grid=(split, npc),
        in_specs=[pl.BlockSpec((tm, cols), in_map),
                  pl.BlockSpec((tm, cols), in_map)],
        out_specs=out_spec,
        scratch_shapes=[pltpu.VMEM((tm, cols), jnp.float32)],
        compiler_params=pltpu.CompilerParams(
            dimension_semantics=("parallel", "arbitrary"),
            vmem_limit_bytes=int(vmem)),
    )(x2, t2)

    total_sum = jnp.sum(partials)
    if reduction == "sum":
        return total_sum.astype(out_dtype)
    return (total_sum / jnp.float32(total)).astype(out_dtype)


class SigmoidFocalLoss:
    """JAX/Pallas port of muben SigmoidFocalLoss (no learnable parameters)."""

    def __init__(self, gamma_threshold=0.25, gamma=2, reduction: str = "none",
                 approx_sigmoid: bool = True):
        self.gamma_threshold = gamma_threshold
        self.gamma = gamma
        self.reduction = reduction
        self.approx_sigmoid = approx_sigmoid

    def __call__(self, inputs, targets):
        return sigmoid_focal_loss_pallas(
            inputs, targets,
            gamma_threshold=self.gamma_threshold,
            gamma=self.gamma,
            reduction=self.reduction,
            approx_sigmoid=self.approx_sigmoid,
        )


if __name__ == "__main__":
    key = jax.random.PRNGKey(0)
    k1, k2, k3, k4, k5, k6 = jax.random.split(key, 6)

    # Tolerances account for the approximate-EUP reciprocal in the sigmoid.
    approx_tol = dict(atol=2e-3, rtol=2e-2)

    # (batch, n_tasks) logits: 128-aligned total -> zero-copy lane-dense path.
    x1 = jax.random.normal(k1, (16, 128), dtype=jnp.float32) * 3.0
    t1 = jax.random.bernoulli(k2, 0.3, (16, 128)).astype(jnp.float32)
    mod = SigmoidFocalLoss(gamma_threshold=0.25, gamma=2, reduction="none")
    out1 = mod(x1, t1)
    jax.block_until_ready(out1)
    ref1 = _focal_reference(x1, t1)
    assert out1.shape == x1.shape
    assert jnp.allclose(out1, ref1, **approx_tol), "mismatch (none, aligned)"

    # Exact (non-approx) sigmoid path, tight tolerance.
    out1_exact = sigmoid_focal_loss_pallas(x1, t1, reduction="none",
                                           approx_sigmoid=False)
    jax.block_until_ready(out1_exact)
    assert jnp.allclose(out1_exact, ref1, atol=1e-6, rtol=1e-4), \
        "mismatch (none, exact sigmoid)"

    # Non-128-aligned (batch, n_tasks): original layout, no pad/slice copies.
    x2 = jax.random.normal(k3, (7, 53), dtype=jnp.float32) * 2.0
    t2 = jax.random.bernoulli(k4, 0.5, (7, 53)).astype(jnp.float32)
    out2 = mod(x2, t2)
    jax.block_until_ready(out2)
    assert jnp.allclose(out2, _focal_reference(x2, t2), **approx_tol), \
        "mismatch (none, unaligned)"

    # Fused mean: exercises the 2-TensorCore split, partial last block and
    # last-block-only row masking.
    x3 = jax.random.normal(k5, (50, 128), dtype=jnp.float32) * 3.0
    t3 = jax.random.bernoulli(k6, 0.3, (50, 128)).astype(jnp.float32)
    mean_mod = SigmoidFocalLoss(gamma_threshold=0.25, gamma=2, reduction="mean")
    mean_loss = mean_mod(x3, t3)
    jax.block_until_ready(mean_loss)
    assert jnp.allclose(mean_loss, jnp.mean(_focal_reference(x3, t3)),
                        **approx_tol), "mismatch (mean)"

    # Fused sum on the unaligned shape (generic reduce path, (1,1) output).
    sum_mod = SigmoidFocalLoss(gamma_threshold=0.25, gamma=2, reduction="sum")
    sum_loss = sum_mod(x2, t2)
    jax.block_until_ready(sum_loss)
    assert jnp.allclose(sum_loss, jnp.sum(_focal_reference(x2, t2)),
                        atol=1e-2, rtol=2e-2), "mismatch (sum, unaligned)"

    # bf16 streams (halves HBM bytes on v5e/v6e); math stays f32 in-kernel.
    xb = x1.astype(jnp.bfloat16)
    tb = t1.astype(jnp.bfloat16)
    outb = mod(xb, tb)
    jax.block_until_ready(outb)
    refb = _focal_reference(xb, tb)
    assert outb.dtype == jnp.bfloat16
    assert jnp.allclose(outb.astype(jnp.float32), refb, atol=1e-2, rtol=3e-2), \
        "mismatch (none, bf16)"

    print("KERNEL_OK")
</pallas_src>

<mosaic_0001>
module attributes {stable_mosaic.version = 11 : i64} {
  func.func @_map_kernel(%arg0: i32, %arg1: memref<8x256xf32, #tpu.memory_space<vmem>>, %arg2: memref<8x256xf32, #tpu.memory_space<vmem>>, %arg3: memref<8x256xf32, #tpu.memory_space<vmem>>) attributes {dimension_semantics = [#tpu.dimension_semantics<parallel>], iteration_bounds = array<i64: 1>, scalar_prefetch = 0 : i64, scratch_operands = 0 : i64, tpu.core_type = #tpu.core_type<tc>, window_params = [{transform_indices = @transform_0, window_bounds = array<i64: 8, 256>}, {transform_indices = @transform_1, window_bounds = array<i64: 8, 256>}, {transform_indices = @transform_2, window_bounds = array<i64: 8, 256>}]} {
    %c0 = arith.constant 0 : index
    %c0_0 = arith.constant 0 : index
    %0 = vector.load %arg1[%c0, %c0_0] : memref<8x256xf32, #tpu.memory_space<vmem>>, vector<8x256xf32>
    %c0_1 = arith.constant 0 : index
    %c0_2 = arith.constant 0 : index
    %1 = vector.load %arg2[%c0_1, %c0_2] : memref<8x256xf32, #tpu.memory_space<vmem>>, vector<8x256xf32>
    %2 = math.absf %0 : vector<8x256xf32>
    %cst = arith.constant 0.000000e+00 : f32
    %3 = vector.broadcast %cst : f32 to vector<8x256xf32>
    %4 = arith.subf %3, %2 : vector<8x256xf32>
    %5 = math.exp %4 : vector<8x256xf32>
    %cst_3 = arith.constant 1.000000e+00 : f32
    %6 = vector.broadcast %cst_3 : f32 to vector<8x256xf32>
    %7 = arith.addf %6, %5 : vector<8x256xf32>
    %cst_4 = arith.constant 0.000000e+00 : f32
    %8 = vector.broadcast %cst_4 : f32 to vector<8x256xf32>
    %9 = arith.maximumf %0, %8 : vector<8x256xf32>
    %10 = arith.mulf %0, %1 : vector<8x256xf32>
    %11 = arith.subf %9, %10 : vector<8x256xf32>
    %12 = math.log1p %5 : vector<8x256xf32>
    %13 = arith.addf %11, %12 : vector<8x256xf32>
    %14 = tpu.reciprocal %7 {approx = true} : vector<8x256xf32> -> vector<8x256xf32>
    %cst_5 = arith.constant 0.000000e+00 : f32
    %15 = vector.broadcast %cst_5 : f32 to vector<8x256xf32>
    %16 = arith.cmpf oge, %0, %15 : vector<8x256xf32>
    %17 = arith.mulf %5, %14 : vector<8x256xf32>
    %18 = arith.select %16, %14, %17 : vector<8x256xi1>, vector<8x256xf32>
    %19 = arith.addf %18, %1 : vector<8x256xf32>
    %20 = arith.mulf %18, %1 : vector<8x256xf32>
    %cst_6 = arith.constant 2.000000e+00 : f32
    %21 = vector.broadcast %cst_6 : f32 to vector<8x256xf32>
    %22 = arith.mulf %21, %20 : vector<8x256xf32>
    %23 = arith.subf %19, %22 : vector<8x256xf32>
    %24 = arith.mulf %23, %23 : vector<8x256xf32>
    %25 = arith.mulf %13, %24 : vector<8x256xf32>
    %cst_7 = arith.constant -5.000000e-01 : f32
    %26 = vector.broadcast %cst_7 : f32 to vector<8x256xf32>
    %27 = arith.mulf %26, %1 : vector<8x256xf32>
    %cst_8 = arith.constant 7.500000e-01 : f32
    %28 = vector.broadcast %cst_8 : f32 to vector<8x256xf32>
    %29 = arith.addf %28, %27 : vector<8x256xf32>
    %30 = arith.mulf %29, %25 : vector<8x256xf32>
    %c0_9 = arith.constant 0 : index
    %c0_10 = arith.constant 0 : index
    %31 = vector.load %arg3[%c0_9, %c0_10] : memref<8x256xf32, #tpu.memory_space<vmem>>, vector<8x256xf32>
    tpu.vector_store %arg3[%c0_9, %c0_10], %30 {strides = array<i32>} : memref<8x256xf32, #tpu.memory_space<vmem>>, vector<8x256xf32>,
    return
  }
  func.func @transform_0(%arg0: i32) -> (i32, i32) {
    %c0_i32 = arith.constant 0 : i32
    %c0_i32_0 = arith.constant 0 : i32
    return %arg0, %c0_i32 : i32, i32
  }
  func.func @transform_1(%arg0: i32) -> (i32, i32) {
    %c0_i32 = arith.constant 0 : i32
    %c0_i32_0 = arith.constant 0 : i32
    return %arg0, %c0_i32 : i32, i32
  }
  func.func @transform_2(%arg0: i32) -> (i32, i32) {
    %c0_i32 = arith.constant 0 : i32
    %c0_i32_0 = arith.constant 0 : i32
    return %arg0, %c0_i32 : i32, i32
  }
}

</mosaic_0001>

<bundles_post_ra>
// kernel: tpu_custom_call.1
= control target key start
LH: loop header
LB: loop body
LE: loop exit
PB: predicated region body
PF: predicated region fallthrough
CT: control target
= control target key end

     0   :  { %7 = vsyncpa [#allocation3], 0  ;;  %s267_s0 = inlined_call_operand.hbm [shape: f32[8,256], index: 0, kind: input, shape index: {}]   ;;  %s268_s1 = inlined_call_operand.hbm [shape: f32[8,256], index: 1, kind: input, shape index: {}]   ;;  %s269_s2 = inlined_call_operand.hbm [shape: f32[8,256], index: 2, kind: output, shape index: {}]  }
   0x1   :  { %8 = vsyncpa [#allocation6], 0 }
   0x2   :  { %9 = vsyncpa [#allocation4], 0  ;;  %s207_s9 = smov [#allocation2]   ;;  %s208_s11 = smov [#allocation5]  }
   0x3   :  { %s16_s10 = sshll.u32 %s207_s9, 4  ;;  %s26_s12 = sshll.u32 %s208_s11, 4  ;;  %s17_s10 = int_to_ptr.vmem [resolvable:$true] %s16_s10  ;;  %s27_s12 = int_to_ptr.vmem [resolvable:$true] %s26_s12 }
   0x4   :  { %s135_s15 = scalar_lea.hbm %s267_s0, 256 }
   0x5   :  { %p136_p0 = scmp.ne.s32.totalorder %s267_s0, %s135_s15  ;;  %p139_p1 = scmp.lt.u32.totalorder %s135_s15, %s267_s0 }
   0x7   :  { %p141_p2 = pnand %p139_p1, %p136_p0 }
   0x9   :  { %144 = shalt.err (!%p141_p2)
}
   0xa   :  { %s145_s20 = scalar_lea.vmem %s17_s10, 256  ;;  %p150_p4 = scmp.lt.s32.totalorder %s17_s10, %s17_s10 }
   0xb   :  { %p146_p3 = scmp.ne.s32.totalorder %s17_s10, %s145_s20  ;;  %p151_p5 = scmp.lt.s32.totalorder %s145_s20, %s145_s20 }
   0xd   :  { %p152_p6 = por %p151_p5, %p150_p4 }
   0xf   :  { %p153_p7 = pnand %p152_p6, %p146_p3 }
  0x11   :  { %156 = shalt.err (!%p153_p7)
}
  0x12   :  { %19 = dma.hbm_to_vmem [thread:$0]  %s267_s0, 256, %s17_s10, [#allocation3]  }
  0x13   :  { %s157_s25 = scalar_lea.hbm %s268_s1, 256 }
  0x14   :  { %p158_p8 = scmp.ne.s32.totalorder %s268_s1, %s157_s25  ;;  %p161_p9 = scmp.lt.u32.totalorder %s157_s25, %s268_s1 }
  0x16   :  { %p163_p10 = pnand %p161_p9, %p158_p8 }
  0x18   :  { %166 = shalt.err (!%p163_p10)
}
  0x19   :  { %s167_s30 = scalar_lea.vmem %s27_s12, 256  ;;  %p172_p12 = scmp.lt.s32.totalorder %s27_s12, %s27_s12 }
  0x1a   :  { %p168_p11 = scmp.ne.s32.totalorder %s27_s12, %s167_s30  ;;  %p173_p13 = scmp.lt.s32.totalorder %s167_s30, %s167_s30 }
  0x1c   :  { %p174_p0 = por %p173_p13, %p172_p12 }
  0x1e   :  { %p175_p1 = pnand %p174_p0, %p168_p11 }
  0x20   :  { %178 = shalt.err (!%p175_p1)
}
  0x21   :  { %29 = dma.hbm_to_vmem [thread:$0]  %s268_s1, 256, %s27_s12, [#allocation6]  }
  0x22   :  { %201 = dma.done.wait [#allocation3], 256  }
  0x23   :  { %202 = vsyncadd [#allocation3], 4294967040 }
  0x24   :  { %203 = dma.done.wait [#allocation6], 256  }
  0x25   :  { %204 = vsyncadd [#allocation6], 4294967040  ;;  %v36_v0 = vld [vmem:[#allocation2] sm:$0xff]  ;;  %v37_v1 = vld [vmem:[#allocation2 + $0x8] sm:$0xff]  ;;  %s209_s1 = smov [#allocation7]  }
  0x26   :  { %v40_v2 = vand.u32 2147483647, %v36_v0  ;;  %v41_v3 = vand.u32 2147483647, %v37_v1  ;;  %v38_v17 = vld [vmem:[#allocation5] sm:$0xff]  ;;  %v50_v20 = vmax.f32 %v36_v0, 0.0 }
  0x27   :  { %v52_v21 = vmul.f32 %v38_v17, %v36_v0  ;;  %vm78_vm0 = vcmp.ge.f32.partialorder %v36_v0, 0.0  ;;  %v39_v27 = vld [vmem:[#allocation5 + $0x8] sm:$0xff]  ;;  %v51_v30 = vmax.f32 %v37_v1, 0.0  ;;  %vm79_vm2 = vcmp.ge.f32.partialorder %v37_v1, 0.0  ;;  %s110_s4 = sshll.u32 %s209_s1, 4  ;;  %s111_s4 = int_to_ptr.vmem [resolvable:$true] %s110_s4 }
  0x28   :  { %v42_v4 = vsub.f32 0.0, %v40_v2  ;;  %v43_v5 = vsub.f32 0.0, %v41_v3  ;;  %v53_v31 = vmul.f32 %v39_v27, %v37_v1  ;;  %v96_v40 = vmul.f32 -0.5, %v38_v17  ;;  %s179_s5 = scalar_lea.vmem %s111_s4, 256  ;;  %p184_p3 = scmp.lt.s32.totalorder %s111_s4, %s111_s4 }
  0x29   :  { %v54_v36 = vsub.f32 %v50_v20, %v52_v21  ;;  %v97_v50 = vmul.f32 -0.5, %v39_v27  ;;  %p180_p2 = scmp.ne.s32.totalorder %s111_s4, %s179_s5  ;;  %p185_p4 = scmp.lt.s32.totalorder %s179_s5, %s179_s5 }
  0x2a   :  { %v44_v6 = vmul.f32 1.442695, %v42_v4  ;;  %v46_v7 = vmul.f32 1.442695, %v43_v5  ;;  %v55_v43 = vsub.f32 %v51_v30, %v53_v31  ;;  %v98_v52 = vadd.f32 0.75, %v96_v40 }
  0x2b   :  { %v99_v57 = vadd.f32 0.75, %v97_v50  ;;  %p186_p5 = por %p185_p4, %p184_p3 }
  0x2c   :  { %123 = vpow2.f32 %v44_v6 }
  0x2d   :  { %125 = vpow2.f32 %v46_v7  ;;  %p187_p6 = pnand %p186_p5, %p180_p2 }
  0x36   :  { %v124_v8 = vpop.eup %123 }
  0x37   :  { %v126_v9 = vpop.eup %125  ;;  %v48_v10 = vadd.f32 1.0, %v124_v8  ;;  %v59_v12 = vmul.f32 -0.5, %v124_v8  ;;  %v62_v15 = vand.u32 2147483647, %v124_v8 }
  0x38   :  { %v49_v11 = vadd.f32 1.0, %v126_v9  ;;  %v68_v13 = vmul.f32 -0.5, %v126_v9  ;;  %v71_v22 = vand.u32 2147483647, %v126_v9 }
  0x39   :  { %127 = vlog2.f32 %v48_v10  ;;  %v60_v14 = vadd.f32 1.0, %v59_v12  ;;  %vm249_vm1 = vcmp.lt.f32.partialorder %v62_v15, 0.0004427343 }
  0x3a   :  { %129 = vrcp.f32 %v48_v10  ;;  %v69_v18 = vadd.f32 1.0, %v68_v13  ;;  %vm72_vm3 = vcmp.lt.f32.partialorder %v71_v22, 0.0004427343 }
  0x3b   :  { %131 = vlog2.f32 %v49_v11  ;;  %v61_v25 = vmul.f32 %v124_v8, %v60_v14 }
  0x3c   :  { %133 = vrcp.f32 %v49_v11  ;;  %v70_v34 = vmul.f32 %v126_v9, %v69_v18 }
  0x43   :  { %v128_v16 = vpop.eup %127 }
  0x44   :  { %v130_v19 = vpop.eup %129  ;;  %v58_v24 = vmul.f32 0.6931472, %v128_v16 }
  0x45   :  { %v132_v23 = vpop.eup %131  ;;  %v80_v26 = vmul.f32 %v130_v19, %v124_v8 }
  0x46   :  { %v134_v28 = vpop.eup %133  ;;  %v67_v33 = vmul.f32 0.6931472, %v132_v23  ;;  %v64_v39 = vsel %vm249_vm1, %v61_v25, %v58_v24 }
  0x47   :  { %v82_v32 = vsel %vm78_vm0, %v130_v19, %v80_v26  ;;  %v81_v35 = vmul.f32 %v134_v28, %v126_v9  ;;  %v74_v47 = vadd.f32 %v64_v39, %v54_v36 }
  0x48   :  { %v84_v37 = vadd.f32 %v82_v32, %v38_v17  ;;  %v86_v38 = vmul.f32 %v82_v32, %v38_v17  ;;  %v73_v46 = vsel %vm72_vm3, %v70_v34, %v67_v33 }
  0x49   :  { %v83_v41 = vsel %vm79_vm2, %v134_v28, %v81_v35  ;;  %v75_v53 = vadd.f32 %v73_v46, %v55_v43 }
  0x4a   :  { %v88_v42 = vmul.f32 2.0, %v86_v38  ;;  %v85_v44 = vadd.f32 %v83_v41, %v39_v27  ;;  %v87_v45 = vmul.f32 %v83_v41, %v39_v27 }
  0x4c   :  { %v90_v48 = vsub.f32 %v84_v37, %v88_v42  ;;  %v89_v49 = vmul.f32 2.0, %v87_v45 }
  0x4e   :  { %v92_v51 = vmul.f32 %v90_v48, %v90_v48  ;;  %v91_v54 = vsub.f32 %v85_v44, %v89_v49 }
  0x50   :  { %v94_v55 = vmul.f32 %v92_v51, %v74_v47  ;;  %v93_v56 = vmul.f32 %v91_v54, %v91_v54 }
  0x52   :  { %v100_v58 = vmul.f32 %v98_v52, %v94_v55  ;;  %v95_v59 = vmul.f32 %v93_v56, %v75_v53 }
  0x54   :  { %102 = vst [vmem:[#allocation7] sm:$0xff] %v100_v58  ;;  %v101_v60 = vmul.f32 %v99_v57, %v95_v59 }
  0x56   :  { %103 = vst [vmem:[#allocation7 + $0x8] sm:$0xff] %v101_v60 }
  0x57   :  { %190 = shalt.err (!%p187_p6)
}
  0x58   :  { %s191_s8 = scalar_lea.hbm %s269_s2, 256 }
  0x59   :  { %p192_p7 = scmp.ne.s32.totalorder %s269_s2, %s191_s8  ;;  %p195_p8 = scmp.lt.u32.totalorder %s191_s8, %s269_s2 }
  0x5b   :  { %p197_p9 = pnand %p195_p8, %p192_p7 }
  0x5d   :  { %200 = shalt.err (!%p197_p9)
}
  0x5e   :  { %113 = dma.vmem_to_hbm [thread:$0]  %s111_s4, 256, %s269_s2, [#allocation4]  }
  0x5f   :  { %205 = dma.done.wait [#allocation4], 256  }
  0x60   :  { %206 = vsyncadd [#allocation4], 4294967040 }
  0x61   :  { %117 = vsyncpa [#allocation3], 1 }
  0x62   :  { %118 = vsyncpa [#allocation6], 1 }
  0x63   :  { %119 = vsyncpa [#allocation4], 1 }

</bundles_post_ra>
